<compile_context>
chip_gen: v5e
topology: v5e:2x2
jax: 0.10.0
libtpu: 0.0.40
codegen_flags: <defaults>
</compile_context>

<pallas_src>
import functools

import jax
import jax.numpy as jnp
from jax.experimental import pallas as pl
from jax.experimental.pallas import tpu as pltpu


def _round_up(x, m):
    return -(-x // m) * m


def _pool_bounds(out_len, in_len):
    """Static (start, end) pairs used by adaptive_avg_pool along one axis."""
    bounds = []
    for o in range(out_len):
        s = (o * in_len) // out_len
        e = -(-((o + 1) * in_len) // out_len)  # ceil((o+1)*in_len/out_len)
        bounds.append((s, e))
    return tuple(bounds)


def _adaptive_avg_pool_kernel(x_ref, o_ref, *, h_bounds, w_bounds):
    """Block shapes: x_ref (1, H, W, Cb) f32, o_ref (1, OH, OW, Cb) f32.

    Two-stage separable mean (exact for adaptive pooling's axis-aligned,
    uniformly weighted regions).  All bounds are compile-time constants; the
    channel/lane axis is untouched, so real/imag interleaving is preserved.
    """
    for oh, (hs, he) in enumerate(h_bounds):
        # Stage 1: mean over the H-region (leading-dim reduce -> VALU adds
        # over lane-dense vregs).
        row = jnp.mean(x_ref[:, hs:he, :, :], axis=1, keepdims=True)  # (1,1,W,Cb)
        for ow, (ws, we) in enumerate(w_bounds):
            # Stage 2: mean over the W-region (small sublane reduce), stored
            # as a lane-dense (1,1,1,Cb) slab.
            o_ref[:, oh:oh + 1, ow:ow + 1, :] = jnp.mean(
                row[:, :, ws:we, :], axis=2, keepdims=True)


def _choose_channel_block(two_c, H, W, n_batch, *,
                          target_bytes=8 << 20, min_steps=4):
    """Pick the lane-axis (interleaved-channel) tile from PADDED VMEM bytes."""
    w_pad = _round_up(W, 8)

    def padded_bytes(cb):
        return H * w_pad * _round_up(cb, 128) * 4

    if padded_bytes(two_c) <= target_bytes:
        cb = two_c
    else:
        cb = max(128, ((target_bytes // (H * w_pad * 4)) // 128) * 128)
        cb = min(cb, two_c)

    # Keep >= min_steps grid steps so both v7x TensorCores get work and the
    # input DMA pipelines across steps; lane tiles stay multiples of 128.
    while n_batch * pl.cdiv(two_c, cb) < min_steps and cb > 128:
        new_cb = max(128, _round_up(cb // 2, 128))
        if new_cb >= cb:
            break
        cb = new_cb
    return cb


@functools.partial(jax.jit, static_argnames=("output_size",))
def complex_adaptive_avg_pool2d(x, output_size):
    """x: complex array of shape (N, C, H, W). Returns complex64 (N, C, OH, OW)."""
    if isinstance(output_size, int):
        output_size = (output_size, output_size)
    OH, OW = output_size
    N, C, H, W = x.shape
    two_c = 2 * C

    # One fused copy pass: complex NCHW -> f32 channel-last with real/imag
    # interleaved on the lane axis ([r0,i0,r1,i1,...], width 2C).
    xf = jnp.stack([jnp.real(x), jnp.imag(x)], axis=-1)          # (N,C,H,W,2)
    xf = jnp.transpose(xf, (0, 2, 3, 1, 4)).reshape(N, H, W, two_c)
    xf = xf.astype(jnp.float32)

    cb = _choose_channel_block(two_c, H, W, N)
    grid = (N, pl.cdiv(two_c, cb))

    kernel = functools.partial(
        _adaptive_avg_pool_kernel,
        h_bounds=_pool_bounds(OH, H),
        w_bounds=_pool_bounds(OW, W),
    )

    in_spec = pl.BlockSpec((1, H, W, cb), lambda n, c: (n, 0, 0, c))
    out_spec = pl.BlockSpec((1, OH, OW, cb), lambda n, c: (n, 0, 0, c))

    # VMEM accounting with (sublane=8, lane=128) tile padding, double-buffered.
    in_pad = H * _round_up(W, 8) * _round_up(cb, 128) * 4
    out_pad = OH * _round_up(OW, 8) * _round_up(cb, 128) * 4
    vmem_limit = int(min(48 << 20,
                         max(16 << 20, 2 * in_pad + 2 * out_pad + (4 << 20))))

    cost = pl.CostEstimate(
        flops=2 * N * H * W * two_c,                       # two separable mean passes
        transcendentals=0,
        bytes_accessed=4 * N * H * W * two_c + 4 * N * OH * OW * two_c,
    )

    out = pl.pallas_call(
        kernel,
        out_shape=jax.ShapeDtypeStruct((N, OH, OW, two_c), jnp.float32),
        grid_spec=pltpu.PrefetchScalarGridSpec(
            num_scalar_prefetch=0,
            grid=grid,
            in_specs=[in_spec],
            out_specs=out_spec,
        ),
        compiler_params=pltpu.CompilerParams(
            dimension_semantics=("parallel", "parallel"),
            vmem_limit_bytes=vmem_limit),
        cost_estimate=cost,
    )(xf)

    # Tiny output: de-interleave real/imag, restore NCHW, recombine as complex.
    out = out.reshape(N, OH, OW, C, 2)
    out = jnp.transpose(out, (0, 3, 1, 2, 4))               # (N, C, OH, OW, 2)
    return jax.lax.complex(out[..., 0], out[..., 1])


# ----------------------- pure-JAX reference (for checking) --------------------

def adaptive_avg_pool2d_ref(x, output_size):
    """Direct (non-separable) re-implementation of F.adaptive_avg_pool2d."""
    if isinstance(output_size, int):
        output_size = (output_size, output_size)
    OH, OW = output_size
    N, C, H, W = x.shape
    rows = []
    for oh in range(OH):
        hs = (oh * H) // OH
        he = -(-((oh + 1) * H) // OH)
        cols = []
        for ow in range(OW):
            ws = (ow * W) // OW
            we = -(-((ow + 1) * W) // OW)
            cols.append(jnp.mean(x[:, :, hs:he, ws:we], axis=(2, 3)))
        rows.append(jnp.stack(cols, axis=-1))
    return jnp.stack(rows, axis=-2)   # (N, C, OH, OW)


if __name__ == "__main__":
    key = jax.random.PRNGKey(0)
    kr, ki = jax.random.split(key)

    N, C, H, W = 2, 4, 16, 16
    x_real = jax.random.normal(kr, (N, C, H, W), dtype=jnp.float32)
    x_imag = jax.random.normal(ki, (N, C, H, W), dtype=jnp.float32)
    x = jax.lax.complex(x_real, x_imag)     # complex NCHW input, as in the module

    # Exercise even, uneven (overlapping-region), and global pooling cases.
    for out_size in [(4, 4), (7, 5), (1, 1)]:
        got = complex_adaptive_avg_pool2d(x, output_size=out_size)
        jax.block_until_ready(got)
        ref = adaptive_avg_pool2d_ref(x, out_size)
        assert got.shape == (N, C) + out_size, (got.shape, out_size)
        err_r = float(jnp.max(jnp.abs(jnp.real(got) - jnp.real(ref))))
        err_i = float(jnp.max(jnp.abs(jnp.imag(got) - jnp.imag(ref))))
        assert jnp.allclose(jnp.real(got), jnp.real(ref),
                            atol=1e-5, rtol=1e-5), (out_size, err_r)
        assert jnp.allclose(jnp.imag(got), jnp.imag(ref),
                            atol=1e-5, rtol=1e-5), (out_size, err_i)

    print("KERNEL_OK")
</pallas_src>

<mosaic_0001>
module attributes {stable_mosaic.version = 11 : i64} {
  func.func @_adaptive_avg_pool_kernel(%arg0: i32, %arg1: i32, %arg2: memref<1x16x16x8xf32, #tpu.memory_space<vmem>>, %arg3: memref<1x4x4x8xf32, #tpu.memory_space<vmem>>) attributes {dimension_semantics = [#tpu.dimension_semantics<parallel>, #tpu.dimension_semantics<parallel>], iteration_bounds = array<i64: 2, 1>, scalar_prefetch = 0 : i64, scratch_operands = 0 : i64, tpu.core_type = #tpu.core_type<tc>, window_params = [{transform_indices = @transform_0, window_bounds = array<i64: 1, 16, 16, 8>}, {transform_indices = @transform_1, window_bounds = array<i64: 1, 4, 4, 8>}]} {
    %c0 = arith.constant 0 : index
    %c0_0 = arith.constant 0 : index
    %c0_1 = arith.constant 0 : index
    %c0_2 = arith.constant 0 : index
    %0 = vector.load %arg2[%c0, %c0_0, %c0_1, %c0_2] : memref<1x16x16x8xf32, #tpu.memory_space<vmem>>, vector<1x4x16x8xf32>
    %cst = arith.constant dense<0.000000e+00> : vector<1x16x8xf32>
    %1 = vector.multi_reduction <add>, %0, %cst [1] : vector<1x4x16x8xf32> to vector<1x16x8xf32>
    %2 = vector.shape_cast %1 : vector<1x16x8xf32> to vector<1x1x16x8xf32>
    %cst_3 = arith.constant 4.000000e+00 : f32
    %3 = vector.broadcast %cst_3 : f32 to vector<1x1x16x8xf32>
    %4 = arith.divf %2, %3 : vector<1x1x16x8xf32>
    %5 = vector.extract_strided_slice %4 {offsets = [0, 0, 0, 0], sizes = [1, 1, 4, 8], strides = [1, 1, 1, 1]} : vector<1x1x16x8xf32> to vector<1x1x4x8xf32>
    %cst_4 = arith.constant dense<0.000000e+00> : vector<1x1x8xf32>
    %6 = vector.multi_reduction <add>, %5, %cst_4 [2] : vector<1x1x4x8xf32> to vector<1x1x8xf32>
    %7 = vector.shape_cast %6 : vector<1x1x8xf32> to vector<1x1x1x8xf32>
    %cst_5 = arith.constant 4.000000e+00 : f32
    %8 = vector.broadcast %cst_5 : f32 to vector<1x1x1x8xf32>
    %9 = arith.divf %7, %8 : vector<1x1x1x8xf32>
    %c0_6 = arith.constant 0 : index
    %c0_7 = arith.constant 0 : index
    %c0_8 = arith.constant 0 : index
    %c0_9 = arith.constant 0 : index
    %10 = vector.load %arg3[%c0_6, %c0_7, %c0_8, %c0_9] : memref<1x4x4x8xf32, #tpu.memory_space<vmem>>, vector<1x1x1x8xf32>
    tpu.vector_store %arg3[%c0_6, %c0_7, %c0_8, %c0_9], %9 {strides = array<i32>} : memref<1x4x4x8xf32, #tpu.memory_space<vmem>>, vector<1x1x1x8xf32>,
    %11 = vector.extract_strided_slice %4 {offsets = [0, 0, 4, 0], sizes = [1, 1, 4, 8], strides = [1, 1, 1, 1]} : vector<1x1x16x8xf32> to vector<1x1x4x8xf32>
    %cst_10 = arith.constant dense<0.000000e+00> : vector<1x1x8xf32>
    %12 = vector.multi_reduction <add>, %11, %cst_10 [2] : vector<1x1x4x8xf32> to vector<1x1x8xf32>
    %13 = vector.shape_cast %12 : vector<1x1x8xf32> to vector<1x1x1x8xf32>
    %cst_11 = arith.constant 4.000000e+00 : f32
    %14 = vector.broadcast %cst_11 : f32 to vector<1x1x1x8xf32>
    %15 = arith.divf %13, %14 : vector<1x1x1x8xf32>
    %c0_12 = arith.constant 0 : index
    %c0_13 = arith.constant 0 : index
    %c1 = arith.constant 1 : index
    %c0_14 = arith.constant 0 : index
    %16 = vector.load %arg3[%c0_12, %c0_13, %c1, %c0_14] : memref<1x4x4x8xf32, #tpu.memory_space<vmem>>, vector<1x1x1x8xf32>
    tpu.vector_store %arg3[%c0_12, %c0_13, %c1, %c0_14], %15 {strides = array<i32>} : memref<1x4x4x8xf32, #tpu.memory_space<vmem>>, vector<1x1x1x8xf32>,
    %17 = vector.extract_strided_slice %4 {offsets = [0, 0, 8, 0], sizes = [1, 1, 4, 8], strides = [1, 1, 1, 1]} : vector<1x1x16x8xf32> to vector<1x1x4x8xf32>
    %cst_15 = arith.constant dense<0.000000e+00> : vector<1x1x8xf32>
    %18 = vector.multi_reduction <add>, %17, %cst_15 [2] : vector<1x1x4x8xf32> to vector<1x1x8xf32>
    %19 = vector.shape_cast %18 : vector<1x1x8xf32> to vector<1x1x1x8xf32>
    %cst_16 = arith.constant 4.000000e+00 : f32
    %20 = vector.broadcast %cst_16 : f32 to vector<1x1x1x8xf32>
    %21 = arith.divf %19, %20 : vector<1x1x1x8xf32>
    %c0_17 = arith.constant 0 : index
    %c0_18 = arith.constant 0 : index
    %c2 = arith.constant 2 : index
    %c0_19 = arith.constant 0 : index
    %22 = vector.load %arg3[%c0_17, %c0_18, %c2, %c0_19] : memref<1x4x4x8xf32, #tpu.memory_space<vmem>>, vector<1x1x1x8xf32>
    tpu.vector_store %arg3[%c0_17, %c0_18, %c2, %c0_19], %21 {strides = array<i32>} : memref<1x4x4x8xf32, #tpu.memory_space<vmem>>, vector<1x1x1x8xf32>,
    %23 = vector.extract_strided_slice %4 {offsets = [0, 0, 12, 0], sizes = [1, 1, 4, 8], strides = [1, 1, 1, 1]} : vector<1x1x16x8xf32> to vector<1x1x4x8xf32>
    %cst_20 = arith.constant dense<0.000000e+00> : vector<1x1x8xf32>
    %24 = vector.multi_reduction <add>, %23, %cst_20 [2] : vector<1x1x4x8xf32> to vector<1x1x8xf32>
    %25 = vector.shape_cast %24 : vector<1x1x8xf32> to vector<1x1x1x8xf32>
    %cst_21 = arith.constant 4.000000e+00 : f32
    %26 = vector.broadcast %cst_21 : f32 to vector<1x1x1x8xf32>
    %27 = arith.divf %25, %26 : vector<1x1x1x8xf32>
    %c0_22 = arith.constant 0 : index
    %c0_23 = arith.constant 0 : index
    %c3 = arith.constant 3 : index
    %c0_24 = arith.constant 0 : index
    %28 = vector.load %arg3[%c0_22, %c0_23, %c3, %c0_24] : memref<1x4x4x8xf32, #tpu.memory_space<vmem>>, vector<1x1x1x8xf32>
    tpu.vector_store %arg3[%c0_22, %c0_23, %c3, %c0_24], %27 {strides = array<i32>} : memref<1x4x4x8xf32, #tpu.memory_space<vmem>>, vector<1x1x1x8xf32>,
    %c0_25 = arith.constant 0 : index
    %c4 = arith.constant 4 : index
    %c0_26 = arith.constant 0 : index
    %c0_27 = arith.constant 0 : index
    %29 = vector.load %arg2[%c0_25, %c4, %c0_26, %c0_27] : memref<1x16x16x8xf32, #tpu.memory_space<vmem>>, vector<1x4x16x8xf32>
    %cst_28 = arith.constant dense<0.000000e+00> : vector<1x16x8xf32>
    %30 = vector.multi_reduction <add>, %29, %cst_28 [1] : vector<1x4x16x8xf32> to vector<1x16x8xf32>
    %31 = vector.shape_cast %30 : vector<1x16x8xf32> to vector<1x1x16x8xf32>
    %cst_29 = arith.constant 4.000000e+00 : f32
    %32 = vector.broadcast %cst_29 : f32 to vector<1x1x16x8xf32>
    %33 = arith.divf %31, %32 : vector<1x1x16x8xf32>
    %34 = vector.extract_strided_slice %33 {offsets = [0, 0, 0, 0], sizes = [1, 1, 4, 8], strides = [1, 1, 1, 1]} : vector<1x1x16x8xf32> to vector<1x1x4x8xf32>
    %cst_30 = arith.constant dense<0.000000e+00> : vector<1x1x8xf32>
    %35 = vector.multi_reduction <add>, %34, %cst_30 [2] : vector<1x1x4x8xf32> to vector<1x1x8xf32>
    %36 = vector.shape_cast %35 : vector<1x1x8xf32> to vector<1x1x1x8xf32>
    %cst_31 = arith.constant 4.000000e+00 : f32
    %37 = vector.broadcast %cst_31 : f32 to vector<1x1x1x8xf32>
    %38 = arith.divf %36, %37 : vector<1x1x1x8xf32>
    %c0_32 = arith.constant 0 : index
    %c1_33 = arith.constant 1 : index
    %c0_34 = arith.constant 0 : index
    %c0_35 = arith.constant 0 : index
    %39 = vector.load %arg3[%c0_32, %c1_33, %c0_34, %c0_35] : memref<1x4x4x8xf32, #tpu.memory_space<vmem>>, vector<1x1x1x8xf32>
    tpu.vector_store %arg3[%c0_32, %c1_33, %c0_34, %c0_35], %38 {strides = array<i32>} : memref<1x4x4x8xf32, #tpu.memory_space<vmem>>, vector<1x1x1x8xf32>,
    %40 = vector.extract_strided_slice %33 {offsets = [0, 0, 4, 0], sizes = [1, 1, 4, 8], strides = [1, 1, 1, 1]} : vector<1x1x16x8xf32> to vector<1x1x4x8xf32>
    %cst_36 = arith.constant dense<0.000000e+00> : vector<1x1x8xf32>
    %41 = vector.multi_reduction <add>, %40, %cst_36 [2] : vector<1x1x4x8xf32> to vector<1x1x8xf32>
    %42 = vector.shape_cast %41 : vector<1x1x8xf32> to vector<1x1x1x8xf32>
    %cst_37 = arith.constant 4.000000e+00 : f32
    %43 = vector.broadcast %cst_37 : f32 to vector<1x1x1x8xf32>
    %44 = arith.divf %42, %43 : vector<1x1x1x8xf32>
    %c0_38 = arith.constant 0 : index
    %c1_39 = arith.constant 1 : index
    %c1_40 = arith.constant 1 : index
    %c0_41 = arith.constant 0 : index
    %45 = vector.load %arg3[%c0_38, %c1_39, %c1_40, %c0_41] : memref<1x4x4x8xf32, #tpu.memory_space<vmem>>, vector<1x1x1x8xf32>
    tpu.vector_store %arg3[%c0_38, %c1_39, %c1_40, %c0_41], %44 {strides = array<i32>} : memref<1x4x4x8xf32, #tpu.memory_space<vmem>>, vector<1x1x1x8xf32>,
    %46 = vector.extract_strided_slice %33 {offsets = [0, 0, 8, 0], sizes = [1, 1, 4, 8], strides = [1, 1, 1, 1]} : vector<1x1x16x8xf32> to vector<1x1x4x8xf32>
    %cst_42 = arith.constant dense<0.000000e+00> : vector<1x1x8xf32>
    %47 = vector.multi_reduction <add>, %46, %cst_42 [2] : vector<1x1x4x8xf32> to vector<1x1x8xf32>
    %48 = vector.shape_cast %47 : vector<1x1x8xf32> to vector<1x1x1x8xf32>
    %cst_43 = arith.constant 4.000000e+00 : f32
    %49 = vector.broadcast %cst_43 : f32 to vector<1x1x1x8xf32>
    %50 = arith.divf %48, %49 : vector<1x1x1x8xf32>
    %c0_44 = arith.constant 0 : index
    %c1_45 = arith.constant 1 : index
    %c2_46 = arith.constant 2 : index
    %c0_47 = arith.constant 0 : index
    %51 = vector.load %arg3[%c0_44, %c1_45, %c2_46, %c0_47] : memref<1x4x4x8xf32, #tpu.memory_space<vmem>>, vector<1x1x1x8xf32>
    tpu.vector_store %arg3[%c0_44, %c1_45, %c2_46, %c0_47], %50 {strides = array<i32>} : memref<1x4x4x8xf32, #tpu.memory_space<vmem>>, vector<1x1x1x8xf32>,
    %52 = vector.extract_strided_slice %33 {offsets = [0, 0, 12, 0], sizes = [1, 1, 4, 8], strides = [1, 1, 1, 1]} : vector<1x1x16x8xf32> to vector<1x1x4x8xf32>
    %cst_48 = arith.constant dense<0.000000e+00> : vector<1x1x8xf32>
    %53 = vector.multi_reduction <add>, %52, %cst_48 [2] : vector<1x1x4x8xf32> to vector<1x1x8xf32>
    %54 = vector.shape_cast %53 : vector<1x1x8xf32> to vector<1x1x1x8xf32>
    %cst_49 = arith.constant 4.000000e+00 : f32
    %55 = vector.broadcast %cst_49 : f32 to vector<1x1x1x8xf32>
    %56 = arith.divf %54, %55 : vector<1x1x1x8xf32>
    %c0_50 = arith.constant 0 : index
    %c1_51 = arith.constant 1 : index
    %c3_52 = arith.constant 3 : index
    %c0_53 = arith.constant 0 : index
    %57 = vector.load %arg3[%c0_50, %c1_51, %c3_52, %c0_53] : memref<1x4x4x8xf32, #tpu.memory_space<vmem>>, vector<1x1x1x8xf32>
    tpu.vector_store %arg3[%c0_50, %c1_51, %c3_52, %c0_53], %56 {strides = array<i32>} : memref<1x4x4x8xf32, #tpu.memory_space<vmem>>, vector<1x1x1x8xf32>,
    %c0_54 = arith.constant 0 : index
    %c8 = arith.constant 8 : index
    %c0_55 = arith.constant 0 : index
    %c0_56 = arith.constant 0 : index
    %58 = vector.load %arg2[%c0_54, %c8, %c0_55, %c0_56] : memref<1x16x16x8xf32, #tpu.memory_space<vmem>>, vector<1x4x16x8xf32>
    %cst_57 = arith.constant dense<0.000000e+00> : vector<1x16x8xf32>
    %59 = vector.multi_reduction <add>, %58, %cst_57 [1] : vector<1x4x16x8xf32> to vector<1x16x8xf32>
    %60 = vector.shape_cast %59 : vector<1x16x8xf32> to vector<1x1x16x8xf32>
    %cst_58 = arith.constant 4.000000e+00 : f32
    %61 = vector.broadcast %cst_58 : f32 to vector<1x1x16x8xf32>
    %62 = arith.divf %60, %61 : vector<1x1x16x8xf32>
    %63 = vector.extract_strided_slice %62 {offsets = [0, 0, 0, 0], sizes = [1, 1, 4, 8], strides = [1, 1, 1, 1]} : vector<1x1x16x8xf32> to vector<1x1x4x8xf32>
    %cst_59 = arith.constant dense<0.000000e+00> : vector<1x1x8xf32>
    %64 = vector.multi_reduction <add>, %63, %cst_59 [2] : vector<1x1x4x8xf32> to vector<1x1x8xf32>
    %65 = vector.shape_cast %64 : vector<1x1x8xf32> to vector<1x1x1x8xf32>
    %cst_60 = arith.constant 4.000000e+00 : f32
    %66 = vector.broadcast %cst_60 : f32 to vector<1x1x1x8xf32>
    %67 = arith.divf %65, %66 : vector<1x1x1x8xf32>
    %c0_61 = arith.constant 0 : index
    %c2_62 = arith.constant 2 : index
    %c0_63 = arith.constant 0 : index
    %c0_64 = arith.constant 0 : index
    %68 = vector.load %arg3[%c0_61, %c2_62, %c0_63, %c0_64] : memref<1x4x4x8xf32, #tpu.memory_space<vmem>>, vector<1x1x1x8xf32>
    tpu.vector_store %arg3[%c0_61, %c2_62, %c0_63, %c0_64], %67 {strides = array<i32>} : memref<1x4x4x8xf32, #tpu.memory_space<vmem>>, vector<1x1x1x8xf32>,
    %69 = vector.extract_strided_slice %62 {offsets = [0, 0, 4, 0], sizes = [1, 1, 4, 8], strides = [1, 1, 1, 1]} : vector<1x1x16x8xf32> to vector<1x1x4x8xf32>
    %cst_65 = arith.constant dense<0.000000e+00> : vector<1x1x8xf32>
    %70 = vector.multi_reduction <add>, %69, %cst_65 [2] : vector<1x1x4x8xf32> to vector<1x1x8xf32>
    %71 = vector.shape_cast %70 : vector<1x1x8xf32> to vector<1x1x1x8xf32>
    %cst_66 = arith.constant 4.000000e+00 : f32
    %72 = vector.broadcast %cst_66 : f32 to vector<1x1x1x8xf32>
    %73 = arith.divf %71, %72 : vector<1x1x1x8xf32>
    %c0_67 = arith.constant 0 : index
    %c2_68 = arith.constant 2 : index
    %c1_69 = arith.constant 1 : index
    %c0_70 = arith.constant 0 : index
    %74 = vector.load %arg3[%c0_67, %c2_68, %c1_69, %c0_70] : memref<1x4x4x8xf32, #tpu.memory_space<vmem>>, vector<1x1x1x8xf32>
    tpu.vector_store %arg3[%c0_67, %c2_68, %c1_69, %c0_70], %73 {strides = array<i32>} : memref<1x4x4x8xf32, #tpu.memory_space<vmem>>, vector<1x1x1x8xf32>,
    %75 = vector.extract_strided_slice %62 {offsets = [0, 0, 8, 0], sizes = [1, 1, 4, 8], strides = [1, 1, 1, 1]} : vector<1x1x16x8xf32> to vector<1x1x4x8xf32>
    %cst_71 = arith.constant dense<0.000000e+00> : vector<1x1x8xf32>
    %76 = vector.multi_reduction <add>, %75, %cst_71 [2] : vector<1x1x4x8xf32> to vector<1x1x8xf32>
    %77 = vector.shape_cast %76 : vector<1x1x8xf32> to vector<1x1x1x8xf32>
    %cst_72 = arith.constant 4.000000e+00 : f32
    %78 = vector.broadcast %cst_72 : f32 to vector<1x1x1x8xf32>
    %79 = arith.divf %77, %78 : vector<1x1x1x8xf32>
    %c0_73 = arith.constant 0 : index
    %c2_74 = arith.constant 2 : index
    %c2_75 = arith.constant 2 : index
    %c0_76 = arith.constant 0 : index
    %80 = vector.load %arg3[%c0_73, %c2_74, %c2_75, %c0_76] : memref<1x4x4x8xf32, #tpu.memory_space<vmem>>, vector<1x1x1x8xf32>
    tpu.vector_store %arg3[%c0_73, %c2_74, %c2_75, %c0_76], %79 {strides = array<i32>} : memref<1x4x4x8xf32, #tpu.memory_space<vmem>>, vector<1x1x1x8xf32>,
    %81 = vector.extract_strided_slice %62 {offsets = [0, 0, 12, 0], sizes = [1, 1, 4, 8], strides = [1, 1, 1, 1]} : vector<1x1x16x8xf32> to vector<1x1x4x8xf32>
    %cst_77 = arith.constant dense<0.000000e+00> : vector<1x1x8xf32>
    %82 = vector.multi_reduction <add>, %81, %cst_77 [2] : vector<1x1x4x8xf32> to vector<1x1x8xf32>
    %83 = vector.shape_cast %82 : vector<1x1x8xf32> to vector<1x1x1x8xf32>
    %cst_78 = arith.constant 4.000000e+00 : f32
    %84 = vector.broadcast %cst_78 : f32 to vector<1x1x1x8xf32>
    %85 = arith.divf %83, %84 : vector<1x1x1x8xf32>
    %c0_79 = arith.constant 0 : index
    %c2_80 = arith.constant 2 : index
    %c3_81 = arith.constant 3 : index
    %c0_82 = arith.constant 0 : index
    %86 = vector.load %arg3[%c0_79, %c2_80, %c3_81, %c0_82] : memref<1x4x4x8xf32, #tpu.memory_space<vmem>>, vector<1x1x1x8xf32>
    tpu.vector_store %arg3[%c0_79, %c2_80, %c3_81, %c0_82], %85 {strides = array<i32>} : memref<1x4x4x8xf32, #tpu.memory_space<vmem>>, vector<1x1x1x8xf32>,
    %c0_83 = arith.constant 0 : index
    %c12 = arith.constant 12 : index
    %c0_84 = arith.constant 0 : index
    %c0_85 = arith.constant 0 : index
    %87 = vector.load %arg2[%c0_83, %c12, %c0_84, %c0_85] : memref<1x16x16x8xf32, #tpu.memory_space<vmem>>, vector<1x4x16x8xf32>
    %cst_86 = arith.constant dense<0.000000e+00> : vector<1x16x8xf32>
    %88 = vector.multi_reduction <add>, %87, %cst_86 [1] : vector<1x4x16x8xf32> to vector<1x16x8xf32>
    %89 = vector.shape_cast %88 : vector<1x16x8xf32> to vector<1x1x16x8xf32>
    %cst_87 = arith.constant 4.000000e+00 : f32
    %90 = vector.broadcast %cst_87 : f32 to vector<1x1x16x8xf32>
    %91 = arith.divf %89, %90 : vector<1x1x16x8xf32>
    %92 = vector.extract_strided_slice %91 {offsets = [0, 0, 0, 0], sizes = [1, 1, 4, 8], strides = [1, 1, 1, 1]} : vector<1x1x16x8xf32> to vector<1x1x4x8xf32>
    %cst_88 = arith.constant dense<0.000000e+00> : vector<1x1x8xf32>
    %93 = vector.multi_reduction <add>, %92, %cst_88 [2] : vector<1x1x4x8xf32> to vector<1x1x8xf32>
    %94 = vector.shape_cast %93 : vector<1x1x8xf32> to vector<1x1x1x8xf32>
    %cst_89 = arith.constant 4.000000e+00 : f32
    %95 = vector.broadcast %cst_89 : f32 to vector<1x1x1x8xf32>
    %96 = arith.divf %94, %95 : vector<1x1x1x8xf32>
    %c0_90 = arith.constant 0 : index
    %c3_91 = arith.constant 3 : index
    %c0_92 = arith.constant 0 : index
    %c0_93 = arith.constant 0 : index
    %97 = vector.load %arg3[%c0_90, %c3_91, %c0_92, %c0_93] : memref<1x4x4x8xf32, #tpu.memory_space<vmem>>, vector<1x1x1x8xf32>
    tpu.vector_store %arg3[%c0_90, %c3_91, %c0_92, %c0_93], %96 {strides = array<i32>} : memref<1x4x4x8xf32, #tpu.memory_space<vmem>>, vector<1x1x1x8xf32>,
    %98 = vector.extract_strided_slice %91 {offsets = [0, 0, 4, 0], sizes = [1, 1, 4, 8], strides = [1, 1, 1, 1]} : vector<1x1x16x8xf32> to vector<1x1x4x8xf32>
    %cst_94 = arith.constant dense<0.000000e+00> : vector<1x1x8xf32>
    %99 = vector.multi_reduction <add>, %98, %cst_94 [2] : vector<1x1x4x8xf32> to vector<1x1x8xf32>
    %100 = vector.shape_cast %99 : vector<1x1x8xf32> to vector<1x1x1x8xf32>
    %cst_95 = arith.constant 4.000000e+00 : f32
    %101 = vector.broadcast %cst_95 : f32 to vector<1x1x1x8xf32>
    %102 = arith.divf %100, %101 : vector<1x1x1x8xf32>
    %c0_96 = arith.constant 0 : index
    %c3_97 = arith.constant 3 : index
    %c1_98 = arith.constant 1 : index
    %c0_99 = arith.constant 0 : index
    %103 = vector.load %arg3[%c0_96, %c3_97, %c1_98, %c0_99] : memref<1x4x4x8xf32, #tpu.memory_space<vmem>>, vector<1x1x1x8xf32>
    tpu.vector_store %arg3[%c0_96, %c3_97, %c1_98, %c0_99], %102 {strides = array<i32>} : memref<1x4x4x8xf32, #tpu.memory_space<vmem>>, vector<1x1x1x8xf32>,
    %104 = vector.extract_strided_slice %91 {offsets = [0, 0, 8, 0], sizes = [1, 1, 4, 8], strides = [1, 1, 1, 1]} : vector<1x1x16x8xf32> to vector<1x1x4x8xf32>
    %cst_100 = arith.constant dense<0.000000e+00> : vector<1x1x8xf32>
    %105 = vector.multi_reduction <add>, %104, %cst_100 [2] : vector<1x1x4x8xf32> to vector<1x1x8xf32>
    %106 = vector.shape_cast %105 : vector<1x1x8xf32> to vector<1x1x1x8xf32>
    %cst_101 = arith.constant 4.000000e+00 : f32
    %107 = vector.broadcast %cst_101 : f32 to vector<1x1x1x8xf32>
    %108 = arith.divf %106, %107 : vector<1x1x1x8xf32>
    %c0_102 = arith.constant 0 : index
    %c3_103 = arith.constant 3 : index
    %c2_104 = arith.constant 2 : index
    %c0_105 = arith.constant 0 : index
    %109 = vector.load %arg3[%c0_102, %c3_103, %c2_104, %c0_105] : memref<1x4x4x8xf32, #tpu.memory_space<vmem>>, vector<1x1x1x8xf32>
    tpu.vector_store %arg3[%c0_102, %c3_103, %c2_104, %c0_105], %108 {strides = array<i32>} : memref<1x4x4x8xf32, #tpu.memory_space<vmem>>, vector<1x1x1x8xf32>,
    %110 = vector.extract_strided_slice %91 {offsets = [0, 0, 12, 0], sizes = [1, 1, 4, 8], strides = [1, 1, 1, 1]} : vector<1x1x16x8xf32> to vector<1x1x4x8xf32>
    %cst_106 = arith.constant dense<0.000000e+00> : vector<1x1x8xf32>
    %111 = vector.multi_reduction <add>, %110, %cst_106 [2] : vector<1x1x4x8xf32> to vector<1x1x8xf32>
    %112 = vector.shape_cast %111 : vector<1x1x8xf32> to vector<1x1x1x8xf32>
    %cst_107 = arith.constant 4.000000e+00 : f32
    %113 = vector.broadcast %cst_107 : f32 to vector<1x1x1x8xf32>
    %114 = arith.divf %112, %113 : vector<1x1x1x8xf32>
    %c0_108 = arith.constant 0 : index
    %c3_109 = arith.constant 3 : index
    %c3_110 = arith.constant 3 : index
    %c0_111 = arith.constant 0 : index
    %115 = vector.load %arg3[%c0_108, %c3_109, %c3_110, %c0_111] : memref<1x4x4x8xf32, #tpu.memory_space<vmem>>, vector<1x1x1x8xf32>
    tpu.vector_store %arg3[%c0_108, %c3_109, %c3_110, %c0_111], %114 {strides = array<i32>} : memref<1x4x4x8xf32, #tpu.memory_space<vmem>>, vector<1x1x1x8xf32>,
    return
  }
  func.func @transform_0(%arg0: i32, %arg1: i32) -> (i32, i32, i32, i32) {
    %c0_i32 = arith.constant 0 : i32
    %c0_i32_0 = arith.constant 0 : i32
    %c0_i32_1 = arith.constant 0 : i32
    return %arg0, %c0_i32, %c0_i32_0, %arg1 : i32, i32, i32, i32
  }
  func.func @transform_1(%arg0: i32, %arg1: i32) -> (i32, i32, i32, i32) {
    %c0_i32 = arith.constant 0 : i32
    %c0_i32_0 = arith.constant 0 : i32
    %c0_i32_1 = arith.constant 0 : i32
    return %arg0, %c0_i32, %c0_i32_0, %arg1 : i32, i32, i32, i32
  }
}

</mosaic_0001>

<bundles_post_ra>
// kernel: custom-call
= control target key start
LH: loop header
LB: loop body
LE: loop exit
PB: predicated region body
PF: predicated region fallthrough
CT: control target
= control target key end

     0   :  { %2 = vsyncpa [#allocation0], 0  ;;  %s55_s0 = inlined_call_operand.hbm [shape: c64[2,4,16,16], index: 0, kind: input, shape index: {}]   ;;  %s56_s1 = inlined_call_operand.vmem [shape: f32[2,4,16,16], index: 1, kind: output, shape index: {}]  }
   0x1   :  { %s4_s8 = sshll.u32 %s55_s0, 4  ;;  %s6_s11 = sshll.u32 %s56_s1, 4  ;;  %s5_s8 = int_to_ptr.hbm [resolvable:$true] %s4_s8  ;;  %s7_s11 = int_to_ptr.vmem [resolvable:$true] %s6_s11 }
   0x2   :  { %9 = dma.hbm_to_vmem [thread:$0]  %s5_s8, 2048, %s7_s11, [#allocation0] }
   0x3   :  { %37 = dma.done.wait [#allocation0], 2048  }
   0x4   :  { %38 = vsyncadd [#allocation0], 4294965248 }
   0x5   :  { %12 = vsyncpa [#allocation0], 1 }

// kernel: custom-call.1
= control target key start
LH: loop header
LB: loop body
LE: loop exit
PB: predicated region body
PF: predicated region fallthrough
CT: control target
= control target key end

     0   :  { %s56_s0 = inlined_call_operand.hbm [shape: c64[2,4,16,16], index: 0, kind: input, shape index: {}]   ;;  %s57_s1 = inlined_call_operand.vmem [shape: f32[2,4,16,16], index: 1, kind: output, shape index: {}]  }
   0x1   :  { %s2_s8 = scalar_lea.hbm %s56_s0, 128 }
   0x2   :  { %3 = vsyncpa [#allocation0], 0  ;;  %s5_s9 = sshll.u32 %s2_s8, 4  ;;  %s7_s12 = sshll.u32 %s57_s1, 4  ;;  %s6_s9 = int_to_ptr.hbm [resolvable:$true] %s5_s9  ;;  %s8_s12 = int_to_ptr.vmem [resolvable:$true] %s7_s12 }
   0x3   :  { %10 = dma.hbm_to_vmem [thread:$0]  %s6_s9, 2048, %s8_s12, [#allocation0] }
   0x4   :  { %38 = dma.done.wait [#allocation0], 2048  }
   0x5   :  { %39 = vsyncadd [#allocation0], 4294965248 }
   0x6   :  { %13 = vsyncpa [#allocation0], 1 }

// kernel: custom-call.2
= control target key start
LH: loop header
LB: loop body
LE: loop exit
PB: predicated region body
PF: predicated region fallthrough
CT: control target
= control target key end

     0   :  { %s105_s0 = inlined_call_operand.vmem [shape: f32[2,4,4,4], index: 0, kind: input, shape index: {}]   ;;  %s106_s1 = inlined_call_operand.vmem [shape: f32[2,4,4,4], index: 1, kind: input, shape index: {}]   ;;  %s107_s2 = inlined_call_operand.hbm [shape: c64[2,4,4,4], index: 2, kind: output, shape index: {}]  }
   0x1   :  { %s3_s11 = scalar_lea.hbm %s107_s2, 32 }
   0x2   :  { %4 = vsyncpa [#allocation0], 0  ;;  %s6_s14 = sshll.u32 %s105_s0, 4  ;;  %s8_s17 = sshll.u32 %s107_s2, 4  ;;  %s7_s14 = int_to_ptr.vmem [resolvable:$true] %s6_s14  ;;  %s9_s17 = int_to_ptr.hbm [resolvable:$true] %s8_s17 }
   0x3   :  { %11 = dma.vmem_to_hbm [thread:$0]  %s7_s14, 512, %s9_s17, [#allocation0] }
   0x4   :  { %74 = dma.done.wait [#allocation0], 512  }
   0x5   :  { %75 = vsyncadd [#allocation0], 4294966784 }
   0x6   :  { %14 = vsyncpa [#allocation0], 1 }
   0x7   :  { %15 = vsyncpa [#allocation1], 0  ;;  %s17_s20 = sshll.u32 %s106_s1, 4  ;;  %s19_s21 = sshll.u32 %s3_s11, 4  ;;  %s18_s20 = int_to_ptr.vmem [resolvable:$true] %s17_s20  ;;  %s20_s21 = int_to_ptr.hbm [resolvable:$true] %s19_s21 }
   0x8   :  { %22 = dma.vmem_to_hbm [thread:$0]  %s18_s20, 512, %s20_s21, [#allocation1] }
   0x9   :  { %76 = dma.done.wait [#allocation1], 512  }
   0xa   :  { %77 = vsyncadd [#allocation1], 4294966784 }
   0xb   :  { %25 = vsyncpa [#allocation1], 1 }

// kernel: complex_adaptive_avg_pool2d.1
= control target key start
LH: loop header
LB: loop body
LE: loop exit
PB: predicated region body
PF: predicated region fallthrough
CT: control target
= control target key end

     0   :  { %s622_s6 = smov 0   ;;  %s624_s7 = smov 0   ;;  %s814_s0 = inlined_call_operand.vmem [shape: f32[2,16,16,8], index: 0, kind: input, shape index: {}]   ;;  %s815_s1 = inlined_call_operand.vmem [shape: f32[2,4,4,8], index: 1, kind: output, shape index: {}]  }
   0x1   :  { %s626_s8 = smov 0  }
   0x2 LB: > { %s23_s9 = sadd.s32 1, %s605_s7  ;;  %p515_p0 = scmp.ge.s32.totalorder %s609_s8, 1  ;;  %s609_s8 = sphi %s626_s8, %s11_s8   ;;  %s605_s7 = sphi %s624_s7, %s817_s7   ;;  %s601_s6 = sphi %s622_s6, %s816_s6  }
   0x3   : > { %p25_p1 = scmp.ge.s32.totalorder %s23_s9, 2  ;;  %p106_p2 = scmp.lt.s32.totalorder %s609_s8, 3 }
   0x5   : > { %s819_s9 = smov (%p25_p1, %s23_s9), 0  ;;  %p107_p3 = pnand %p515_p0, %p106_p2 }
   0x6   : > { %p132_p4 = scmp.lt.s32.totalorder (!%p107_p3), %s601_s6, 1 }
   0x7   : > { %110 = sbr.rel (%p107_p3) target bundleno = 81 (0x51), region = 24 }
   0xc   : > { %v611_v0 = vmov 4.0   ;;  %s821_s6 = smov (!%p132_p4, %s601_s6), 1  ;;  %vm156_vm0 = vcmask 64512   ;;  %vm180_vm2 = vcmask 60416   ;;  %vm189_vm3 = vcmask 57344  }
   0xd   : > { %585 = vrcp.f32 %v611_v0  ;;  %s558_s10 = sshll.u32 %s821_s6, 8  ;;  %s559_s14 = sshll.u32 %s821_s6, 4 }
   0xe   : > { %s646_s13 = scalar_lea.vmem %s814_s0, %s558_s10  ;;  %s721_s17 = scalar_lea.vmem %s815_s1, %s559_s14 }
   0xf   : > { %v148_v1 = vld [vmem:[%s646_s13] sm:$0xff]  ;;  %v150_v2 = vld [vmem:[%s646_s13 + $0x10] sm:$0xff]  ;;  %v149_v9 = vld [vmem:[%s646_s13 + $0x8] sm:$0xff] }
  0x10   : > { %v152_v3 = vld [vmem:[%s646_s13 + $0x20] sm:$0xff]  ;;  %v154_v5 = vld [vmem:[%s646_s13 + $0x30] sm:$0xff]  ;;  %v157_v6 = vsel %vm156_vm0, %v148_v1, 0.0  ;;  %v158_v7 = vsel %vm156_vm0, %v150_v2, 0.0  ;;  %v151_v10 = vld [vmem:[%s646_s13 + $0x18] sm:$0xff]  ;;  %v164_v17 = vsel %vm156_vm0, %v149_v9, 0.0 }
  0x11   : > { %v160_v8 = vsel %vm156_vm0, %v152_v3, 0.0  ;;  %v159_v11 = vadd.f32 %v158_v7, %v157_v6  ;;  %v162_v12 = vsel %vm156_vm0, %v154_v5, 0.0  ;;  %v153_v14 = vld [vmem:[%s646_s13 + $0x28] sm:$0xff]  ;;  %v155_v15 = vld [vmem:[%s646_s13 + $0x38] sm:$0xff]  ;;  %v520_v16 = vld [vmem:[%s646_s13 + $0x40] sm:$0xff]  ;;  %v165_v18 = vsel %vm156_vm0, %v151_v10, 0.0 }
  0x12   : > { %v167_v19 = vsel %vm156_vm0, %v153_v14, 0.0  ;;  %v169_v20 = vsel %vm156_vm0, %v155_v15, 0.0  ;;  %v522_v21 = vld [vmem:[%s646_s13 + $0x50] sm:$0xff]  ;;  %v524_v22 = vld [vmem:[%s646_s13 + $0x60] sm:$0xff]  ;;  %v166_v25 = vadd.f32 %v165_v18, %v164_v17  ;;  %v233_v27 = vsel %vm156_vm0, %v520_v16, 0.0  ;;  %v521_v28 = vld [vmem:[%s646_s13 + $0x48] sm:$0xff] }
  0x13   : > { %v586_v4 = vpop.eup %585  ;;  %v161_v23 = vadd.f32 %v160_v8, %v159_v11  ;;  %v526_v26 = vld [vmem:[%s646_s13 + $0x70] sm:$0xff]  ;;  %v523_v29 = vld [vmem:[%s646_s13 + $0x58] sm:$0xff]  ;;  %v234_v30 = vsel %vm156_vm0, %v522_v21, 0.0  ;;  %v236_v31 = vsel %vm156_vm0, %v524_v22, 0.0  ;;  %v525_v33 = vld [vmem:[%s646_s13 + $0x68] sm:$0xff]  ;;  %v240_v35 = vsel %vm156_vm0, %v521_v28, 0.0 }
  0x14   : > { %v172_v13 = vmul.f32 4.0, %v586_v4  ;;  %vm176_vm1 = vweird.f32 %v586_v4  ;;  %v238_v32 = vsel %vm156_vm0, %v526_v26, 0.0  ;;  %v527_v34 = vld [vmem:[%s646_s13 + $0x78] sm:$0xff]  ;;  %v168_v38 = vadd.f32 %v167_v19, %v166_v25  ;;  %v532_v40 = vld [vmem:[%s646_s13 + $0x80] sm:$0xff]  ;;  %v534_v41 = vld [vmem:[%s646_s13 + $0x90] sm:$0xff] }
  0x15   : > { %v163_v36 = vadd.f32 %v162_v12, %v161_v23  ;;  %v235_v39 = vadd.f32 %v234_v30, %v233_v27  ;;  %v536_v42 = vld [vmem:[%s646_s13 + $0xa0] sm:$0xff]  ;;  %v241_v43 = vsel %vm156_vm0, %v523_v29, 0.0  ;;  %v243_v44 = vsel %vm156_vm0, %v525_v33, 0.0  ;;  %v538_v46 = vld [vmem:[%s646_s13 + $0xb0] sm:$0xff]  ;;  %v533_v48 = vld [vmem:[%s646_s13 + $0x88] sm:$0xff] }
  0x16   : > { %v173_v24 = vsub.f32 1.0, %v172_v13  ;;  %v245_v45 = vsel %vm156_vm0, %v527_v34, 0.0  ;;  %v301_v47 = vsel %vm156_vm0, %v532_v40, 0.0  ;;  %v170_v50 = vadd.f32 %v169_v20, %v168_v38  ;;  %v535_v53 = vld [vmem:[%s646_s13 + $0x98] sm:$0xff]  ;;  %v537_v54 = vld [vmem:[%s646_s13 + $0xa8] sm:$0xff] }
  0x17   : > { %v237_v51 = vadd.f32 %v236_v31, %v235_v39  ;;  %v242_v52 = vadd.f32 %v241_v43, %v240_v35  ;;  %v302_v55 = vsel %vm156_vm0, %v534_v41, 0.0  ;;  %v304_v56 = vsel %vm156_vm0, %v536_v42, 0.0 }
  0x18   : > { %v174_v37 = vmul.f32 %v586_v4, %v173_v24  ;;  %v691_v57 = vsel %vm156_vm0, %v538_v46, 0.0  ;;  %v308_v58 = vsel %vm156_vm0, %v533_v48, 0.0  ;;  %v303_v62 = vadd.f32 %v302_v55, %v301_v47 }
  0x19   : > { %v239_v60 = vadd.f32 %v238_v32, %v237_v51  ;;  %v244_v61 = vadd.f32 %v243_v44, %v242_v52  ;;  %v309_v1 = vsel %vm156_vm0, %v535_v53, 0.0  ;;  %v701_v2 = vsel %vm156_vm0, %v537_v54, 0.0 }
  0x1a   : > { %v175_v49 = vadd.f32 %v586_v4, %v174_v37  ;;  %v704_v6 = vadd.f32 %v304_v56, %v303_v62  ;;  %v706_v7 = vadd.f32 %v309_v1, %v308_v58  ;;  %v539_v1 = vld [vmem:[%s646_s13 + $0xb8] sm:$0xff] }
  0x1b   : > { %v246_v5 = vadd.f32 %v245_v45, %v244_v61 }
  0x1c   : > { %v695_v59 = vsel %vm176_vm1, %v586_v4, %v175_v49 }
  0x1d   : > { %v178_v63 = vmul.f32 %v695_v59, %v163_v36  ;;  %v179_v0 = vmul.f32 %v695_v59, %v170_v50  ;;  %v247_v3 = vmul.f32 %v239_v60, %v695_v59  ;;  %v248_v18 = vmul.f32 %v246_v5, %v695_v59 }
  0x1f   : > { %v181_v4 = vsel %vm180_vm2, %v178_v63, 0.0  ;;  %v192_v8 = vrot.slane %v178_v63, 4  ;;  %v203_v9 = vsel %vm180_vm2, %v179_v0, 0.0  ;;  %v213_v10 = vrot.slane %v179_v0, 4 }
  0x20   : > { %v182_v11 = vrot.slane %v181_v4, 4  ;;  %v204_v12 = vrot.slane %v203_v9, 4  ;;  %v249_v13 = vsel %vm180_vm2, %v247_v3, 0.0  ;;  %v260_v14 = vrot.slane %v247_v3, 4 }
  0x21   : > { %v194_v15 = vsel %vm180_vm2, %v192_v8, 0.0  ;;  %v215_v16 = vsel %vm180_vm2, %v213_v10, 0.0  ;;  %v250_v17 = vrot.slane %v249_v13, 4  ;;  %v271_v25 = vsel %vm180_vm2, %v248_v18, 0.0  ;;  %v546_v10 = vld [vmem:[%s646_s13 + $0xd0] sm:$0xff] }
  0x22   : > { %v183_v19 = vadd.f32 %v182_v11, %v181_v4  ;;  %v195_v20 = vrot.slane %v194_v15, 4  ;;  %v205_v21 = vadd.f32 %v204_v12, %v203_v9  ;;  %v216_v22 = vrot.slane %v215_v16, 4  ;;  %v544_v9 = vld [vmem:[%s646_s13 + $0xc0] sm:$0xff] }
  0x23   : > { %v251_v23 = vadd.f32 %v250_v17, %v249_v13  ;;  %v262_v24 = vsel %vm180_vm2, %v260_v14, 0.0  ;;  %v281_v26 = vrot.slane %v248_v18, 4  ;;  %v272_v33 = vrot.slane %v271_v25, 4 }
  0x24   : > { %v184_v27 = vrot.slane %v183_v19, 2  ;;  %v196_v28 = vadd.f32 %v195_v20, %v194_v15  ;;  %v206_v29 = vrot.slane %v205_v21, 2  ;;  %v217_v30 = vadd.f32 %v216_v22, %v215_v16 }
  0x25   : > { %v252_v31 = vrot.slane %v251_v23, 2  ;;  %v263_v32 = vrot.slane %v262_v24, 4  ;;  %v283_v34 = vsel %vm180_vm2, %v281_v26, 0.0  ;;  %v273_v41 = vadd.f32 %v272_v33, %v271_v25  ;;  %v545_v25 = vld [vmem:[%s646_s13 + $0xc8] sm:$0xff] }
  0x26   : > { %v185_v35 = vadd.f32 %v184_v27, %v183_v19  ;;  %v197_v36 = vrot.slane %v196_v28, 2  ;;  %v207_v37 = vadd.f32 %v206_v29, %v205_v21  ;;  %v218_v38 = vrot.slane %v217_v30, 2  ;;  %v548_v19 = vld [vmem:[%s646_s13 + $0xe0] sm:$0xff] }
  0x27   : > { %v253_v39 = vadd.f32 %v252_v31, %v251_v23  ;;  %v264_v40 = vadd.f32 %v263_v32, %v262_v24  ;;  %v284_v42 = vrot.slane %v283_v34, 4  ;;  %v274_v49 = vrot.slane %v273_v41, 2 }
  0x28   : > { %v186_v43 = vrot.slane %v185_v35, 1  ;;  %v198_v44 = vadd.f32 %v197_v36, %v196_v28  ;;  %v208_v45 = vrot.slane %v207_v37, 1  ;;  %v219_v46 = vadd.f32 %v218_v38, %v217_v30 }
  0x29   : > { %v254_v47 = vrot.slane %v253_v39, 1  ;;  %v265_v48 = vrot.slane %v264_v40, 2  ;;  %v285_v50 = vadd.f32 %v284_v42, %v283_v34  ;;  %v275_v58 = vadd.f32 %v274_v49, %v273_v41  ;;  %v547_v34 = vld [vmem:[%s646_s13 + $0xd8] sm:$0xff] }
  0x2a   : > { %v187_v51 = vadd.f32 %v186_v43, %v185_v35  ;;  %v199_v52 = vrot.slane %v198_v44, 1  ;;  %v209_v53 = vadd.f32 %v208_v45, %v207_v37  ;;  %v220_v54 = vrot.slane %v219_v46, 1  ;;  %v549_v35 = vld [vmem:[%s646_s13 + $0xe8] sm:$0xff] }
  0x2b   : > { %v255_v55 = vadd.f32 %v254_v47, %v253_v39  ;;  %v266_v56 = vadd.f32 %v265_v48, %v264_v40  ;;  %v286_v60 = vrot.slane %v285_v50, 2  ;;  %v276_v4 = vrot.slane %v275_v58, 1 }
  0x2c   : > { %v188_v61 = vmul.f32 %v187_v51, %v695_v59  ;;  %v200_v62 = vadd.f32 %v199_v52, %v198_v44  ;;  %v210_v63 = vmul.f32 %v209_v53, %v695_v59  ;;  %v221_v0 = vadd.f32 %v220_v54, %v219_v46  ;;  %v551_v44 = vld [vmem:[%s646_s13 + $0xf8] sm:$0xff] }
  0x2d   : > { %v256_v3 = vmul.f32 %v255_v55, %v695_v59  ;;  %v267_v5 = vrot.slane %v266_v56, 1  ;;  %v287_v8 = vadd.f32 %v286_v60, %v285_v50  ;;  %v307_v13 = vadd.f32 %v691_v57, %v704_v6  ;;  %v550_v57 = vld [vmem:[%s646_s13 + $0xf0] sm:$0xff] }
  0x2e   : > { %190 = vst.msk [vmem:[%s721_s17] sm:$0x1] %vm189_vm3, %v188_v61  ;;  %v201_v11 = vmul.f32 %v200_v62, %v695_v59  ;;  %v222_v12 = vmul.f32 %v221_v0, %v695_v59  ;;  %v312_v14 = vadd.f32 %v701_v2, %v706_v7  ;;  %v277_v16 = vadd.f32 %v276_v4, %v275_v58 }
  0x2f   : > { %211 = vst.msk [vmem:[%s721_s17 + $0x2] sm:$0x1] %vm189_vm3, %v210_v63  ;;  %v268_v15 = vadd.f32 %v267_v5, %v266_v56  ;;  %v288_v17 = vrot.slane %v287_v8, 1  ;;  %v313_v18 = vsel %vm156_vm0, %v539_v1, 0.0  ;;  %v315_v20 = vmul.f32 %v307_v13, %v695_v59 }
  0x30   : > { %202 = vst.msk [vmem:[%s721_s17 + $0x1] sm:$0x1] %vm189_vm3, %v201_v11  ;;  %v314_v21 = vadd.f32 %v313_v18, %v312_v14  ;;  %v369_v6 = vsel %vm156_vm0, %v544_v9, 0.0  ;;  %v370_v2 = vsel %vm156_vm0, %v546_v10, 0.0  ;;  %v278_v22 = vmul.f32 %v277_v16, %v695_v59 }
  0x31   : > { %223 = vst.msk [vmem:[%s721_s17 + $0x3] sm:$0x1] %vm189_vm3, %v222_v12  ;;  %v269_v7 = vmul.f32 %v268_v15, %v695_v59  ;;  %v289_v23 = vadd.f32 %v288_v17, %v287_v8  ;;  %v371_v24 = vadd.f32 %v370_v2, %v369_v6  ;;  %v317_v26 = vsel %vm180_vm2, %v315_v20, 0.0 }
  0x32   : > { %528 = vst.msk [vmem:[%s721_s17 + $0x4] sm:$0x1] %vm189_vm3, %v256_v3  ;;  %v328_v27 = vrot.slane %v315_v20, 4  ;;  %v316_v28 = vmul.f32 %v314_v21, %v695_v59  ;;  %v372_v29 = vsel %vm156_vm0, %v548_v19, 0.0  ;;  %v318_v31 = vrot.slane %v317_v26, 4 }
  0x33   : > { %529 = vst.msk [vmem:[%s721_s17 + $0x5] sm:$0x1] %vm189_vm3, %v269_v7  ;;  %v290_v30 = vmul.f32 %v289_v23, %v695_v59  ;;  %v373_v32 = vadd.f32 %v372_v29, %v371_v24  ;;  %v374_v33 = vsel %vm156_vm0, %v550_v57, 0.0  ;;  %v376_v39 = vsel %vm156_vm0, %v545_v25, 0.0 }
  0x34   : > { %530 = vst.msk [vmem:[%s721_s17 + $0x6] sm:$0x1] %vm189_vm3, %v278_v22  ;;  %v330_v36 = vsel %vm180_vm2, %v328_v27, 0.0  ;;  %v339_v37 = vsel %vm180_vm2, %v316_v28, 0.0  ;;  %v349_v38 = vrot.slane %v316_v28, 4  ;;  %v319_v40 = vadd.f32 %v318_v31, %v317_v26 }
  0x35   : > { %531 = vst.msk [vmem:[%s721_s17 + $0x7] sm:$0x1] %vm189_vm3, %v290_v30  ;;  %v331_v41 = vrot.slane %v330_v36, 4  ;;  %v340_v42 = vrot.slane %v339_v37, 4  ;;  %v375_v43 = vadd.f32 %v374_v33, %v373_v32  ;;  %v377_v46 = vsel %vm156_vm0, %v547_v34, 0.0 }
  0x36   : > { %v351_v45 = vsel %vm180_vm2, %v349_v38, 0.0  ;;  %v379_v47 = vsel %vm156_vm0, %v549_v35, 0.0  ;;  %v320_v48 = vrot.slane %v319_v40, 2  ;;  %v378_v53 = vadd.f32 %v377_v46, %v376_v39 }
  0x37   : > { %v332_v49 = vadd.f32 %v331_v41, %v330_v36  ;;  %v341_v50 = vadd.f32 %v340_v42, %v339_v37  ;;  %v352_v51 = vrot.slane %v351_v45, 4  ;;  %v383_v52 = vmul.f32 %v375_v43, %v695_v59 }
  0x38   : > { %v381_v54 = vsel %vm156_vm0, %v551_v44, 0.0  ;;  %v321_v55 = vadd.f32 %v320_v48, %v319_v40  ;;  %v380_v63 = vadd.f32 %v379_v47, %v378_v53 }
  0x39   : > { %v333_v56 = vrot.slane %v332_v49, 2  ;;  %v342_v58 = vrot.slane %v341_v50, 2  ;;  %v353_v60 = vadd.f32 %v352_v51, %v351_v45  ;;  %v385_v61 = vsel %vm180_vm2, %v383_v52, 0.0 }
  0x3a   : > { %v396_v62 = vrot.slane %v383_v52, 4  ;;  %v322_v0 = vrot.slane %v321_v55, 1  ;;  %v386_v4 = vrot.slane %v385_v61, 4  ;;  %v382_v9 = vadd.f32 %v381_v54, %v380_v63 }
  0x3b   : > { %v334_v1 = vadd.f32 %v333_v56, %v332_v49  ;;  %v343_v3 = vadd.f32 %v342_v58, %v341_v50  ;;  %v354_v5 = vrot.slane %v353_v60, 2 }
  0x3c   : > { %v398_v8 = vsel %vm180_vm2, %v396_v62, 0.0  ;;  %v323_v10 = vadd.f32 %v322_v0, %v321_v55  ;;  %v387_v14 = vadd.f32 %v386_v4, %v385_v61  ;;  %v384_v16 = vmul.f32 %v382_v9, %v695_v59 }
  0x3d   : > { %v335_v11 = vrot.slane %v334_v1, 1  ;;  %v344_v12 = vrot.slane %v343_v3, 1  ;;  %v355_v13 = vadd.f32 %v354_v5, %v353_v60  ;;  %v399_v15 = vrot.slane %v398_v8, 4 }
  0x3e   : > { %v324_v17 = vmul.f32 %v323_v10, %v695_v59  ;;  %v388_v21 = vrot.slane %v387_v14, 2  ;;  %v407_v6 = vsel %vm180_vm2, %v384_v16, 0.0  ;;  %v417_v2 = vrot.slane %v384_v16, 4 }
  0x3f   : > { %v336_v18 = vadd.f32 %v335_v11, %v334_v1  ;;  %v345_v19 = vadd.f32 %v344_v12, %v343_v3  ;;  %v356_v20 = vrot.slane %v355_v13, 1  ;;  %v400_v57 = vadd.f32 %v399_v15, %v398_v8 }
  0x40   : > { %540 = vst.msk [vmem:[%s721_s17 + $0x8] sm:$0x1] %vm189_vm3, %v324_v17  ;;  %v408_v24 = vrot.slane %v407_v6, 4  ;;  %v389_v25 = vadd.f32 %v388_v21, %v387_v14  ;;  %v419_v27 = vsel %vm180_vm2, %v417_v2, 0.0 }
  0x41   : > { %v337_v7 = vmul.f32 %v336_v18, %v695_v59  ;;  %v346_v22 = vmul.f32 %v345_v19, %v695_v59  ;;  %v357_v23 = vadd.f32 %v356_v20, %v355_v13  ;;  %v401_v26 = vrot.slane %v400_v57, 2 }
  0x42   : > { %v409_v29 = vadd.f32 %v408_v24, %v407_v6  ;;  %v420_v30 = vrot.slane %v419_v27, 4  ;;  %v390_v31 = vrot.slane %v389_v25, 1 }
  0x43   : > { %541 = vst.msk [vmem:[%s721_s17 + $0x9] sm:$0x1] %vm189_vm3, %v337_v7  ;;  %v358_v28 = vmul.f32 %v357_v23, %v695_v59  ;;  %v402_v32 = vadd.f32 %v401_v26, %v400_v57 }
  0x44   : > { %542 = vst.msk [vmem:[%s721_s17 + $0xa] sm:$0x1] %vm189_vm3, %v346_v22  ;;  %v410_v33 = vrot.slane %v409_v29, 2  ;;  %v421_v34 = vadd.f32 %v420_v30, %v419_v27  ;;  %v391_v35 = vadd.f32 %v390_v31, %v389_v25 }
  0x45   : > { %543 = vst.msk [vmem:[%s721_s17 + $0xb] sm:$0x1] %vm189_vm3, %v358_v28  ;;  %v403_v36 = vrot.slane %v402_v32, 1 }
  0x46   : > { %v411_v37 = vadd.f32 %v410_v33, %v409_v29  ;;  %v422_v38 = vrot.slane %v421_v34, 2  ;;  %v392_v39 = vmul.f32 %v391_v35, %v695_v59 }
  0x47   : > { %v404_v40 = vadd.f32 %v403_v36, %v402_v32 }
  0x48   : > { %v412_v41 = vrot.slane %v411_v37, 1  ;;  %v423_v42 = vadd.f32 %v422_v38, %v421_v34  ;;  %552 = vst.msk [vmem:[%s721_s17 + $0xc] sm:$0x1] %vm189_vm3, %v392_v39 }
  0x49   : > { %v405_v43 = vmul.f32 %v404_v40, %v695_v59 }
  0x4a   : > { %v413_v44 = vadd.f32 %v412_v41, %v411_v37  ;;  %v424_v45 = vrot.slane %v423_v42, 1 }
  0x4b   : > { %553 = vst.msk [vmem:[%s721_s17 + $0xd] sm:$0x1] %vm189_vm3, %v405_v43 }
  0x4c   : > { %v414_v46 = vmul.f32 %v413_v44, %v695_v59  ;;  %v425_v47 = vadd.f32 %v424_v45, %v423_v42 }
  0x4e   : > { %554 = vst.msk [vmem:[%s721_s17 + $0xe] sm:$0x1] %vm189_vm3, %v414_v46  ;;  %v426_v48 = vmul.f32 %v425_v47, %v695_v59 }
  0x50   : > { %555 = vst.msk [vmem:[%s721_s17 + $0xf] sm:$0x1] %vm189_vm3, %v426_v48 }
  0x51 PF: > { %s11_s8 = sadd.s32 1, %s609_s8   ;;  %s816_s6 = smov %s605_s7 }
  0x52   : > { %p8_p5 = scmp.ge.s32.totalorder %s11_s8, 4   ;;  %s817_s7 = smov %s819_s9 }
  0x54   :  { %10 = sbr.rel (!%p8_p5) target bundleno = 2 (0x2), region = 60 }

</bundles_post_ra>
